<compile_context>
chip_gen: v6e
topology: v6e:2x2x1
jax: 0.10.0
libtpu: 0.0.40
codegen_flags: <defaults>
</compile_context>

<pallas_src>
import functools

import jax
import jax.numpy as jnp
import numpy as np
from jax.experimental import pallas as pl
from jax.experimental.pallas import tpu as pltpu


_SELU_ALPHA = 1.6732632423543772
_SELU_SCALE = 1.0507009873554805


def _round_up(n, m):
    return ((n + m - 1) // m) * m


def _apply_activation(y, activation):
    if activation == "relu":
        return jnp.maximum(y, 0.0)
    if activation == "lrelu":          # nn.LeakyReLU(0.2) in the PyTorch module
        return jnp.where(y >= 0.0, y, 0.2 * y)
    if activation == "tanh":
        return jnp.tanh(y)
    if activation == "selu":
        return _SELU_SCALE * jnp.where(y >= 0.0, y, _SELU_ALPHA * jnp.expm1(y))
    if activation == "none":
        return y
    # TODO(synk): 'prelu' needs the learnable slope parameter; not implemented.
    raise ValueError(f"Unsupported activation: {activation}")


# ---------------------------------------------------------------------------
# Streaming kernel: one (TB, O) output tile of activation((x @ W^T)/sigma + b).
#   scale_ref : (1,)    SMEM  inv_sigma (1.0 when norm != 'sn')
#   x_ref     : (TB, K) VMEM  streamed input row tile (stream_dtype)
#   w_ref     : (O, K)  VMEM  resident, un-normalized weight_bar (stream_dtype)
#   b_ref     : (1, O)  VMEM  resident bias (f32)
#   y_ref     : (TB, O) VMEM  output tile (O on the lane axis -> unmasked vst)
def linear_act_kernel(scale_ref, x_ref, w_ref, b_ref, y_ref, *, activation):
    acc = jax.lax.dot_general(
        x_ref[...], w_ref[...], (((1,), (1,)), ((), ())),
        preferred_element_type=jnp.float32)                    # (TB, O) f32 on MXU
    # Fold the spectral-norm scale here (VPU multiply, free filler in a
    # memory-bound kernel) instead of materializing W_bar/sigma in HBM.
    y = acc * scale_ref[0] + b_ref[...]
    y = _apply_activation(y, activation)
    y_ref[...] = y.astype(y_ref.dtype)


# ---------------------------------------------------------------------------
def spectral_norm_scale(weight_bar, u, power_iterations=1, eps=1e-12):
    """SpectralNorm._update_u_v as tiny plain-jnp matvecs (not worth a launch).

    Returns (inv_sigma, u_new).  Like the PyTorch module, divides by sigma with
    no epsilon guard (sigma ~ the top singular value, never ~0 in practice).
    """
    w = weight_bar.astype(jnp.float32)
    u = u.reshape(-1).astype(jnp.float32)
    v = None
    for _ in range(power_iterations):
        v = w.T @ u
        v = v / (jnp.linalg.norm(v) + eps)
        u = w @ v
        u = u / (jnp.linalg.norm(u) + eps)
    sigma = u @ (w @ v)
    return (1.0 / sigma).astype(jnp.float32), u


def linear_block_forward(x, weight_bar, bias, u=None, *, norm="sn",
                         activation="relu", power_iterations=1,
                         block_rows=512, stream_dtype=jnp.bfloat16,
                         out_dtype=None):
    """linearBlock forward.

    x: (B, K); weight_bar: (O, K); bias: (O,); u: (O,) (required for norm='sn').
    Returns (y, u_new): u_new is the updated left-singular-vector estimate
    (shape (O,), the state the caller threads back next call, mirroring the
    PyTorch in-place buffer update), or None when norm != 'sn'.
    """
    B, K = x.shape
    O, K2 = weight_bar.shape
    assert K == K2, (K, K2)
    if norm not in ("sn", "none"):
        # TODO(synk): 'bn'/'in'/'ln' normalization branches not implemented.
        raise ValueError(f"Unsupported normalization: {norm}")

    if out_dtype is None:
        out_dtype = x.dtype

    # --- spectral norm: 1 power iteration, plain jnp, scalar result only ---
    if norm == "sn":
        assert u is not None
        inv_sigma, u_new = spectral_norm_scale(weight_bar, u, power_iterations)
    else:
        inv_sigma, u_new = jnp.float32(1.0), None
    inv_sigma = inv_sigma.reshape((1,)).astype(jnp.float32)

    # --- streaming dtypes (bf16 by default; f32 accumulation in-kernel) ---
    x_s = x.astype(stream_dtype)
    w_s = weight_bar.astype(stream_dtype)
    b_s = bias.reshape(1, O).astype(jnp.float32)

    # --- batch tile selection: big tiles, but keep >= 2 grid steps so the
    # "parallel" axis can shard across v7x's two TensorCores. ---
    tb = min(int(block_rows), _round_up(B, 8))
    if pl.cdiv(B, tb) < 2 and B >= 16:
        tb = _round_up(pl.cdiv(B, 2), 8)
    tb = max(tb, 8)
    grid = (pl.cdiv(B, tb),)   # ragged last tile handled by Pallas block masking

    # --- explicit scoped-VMEM budget only when the default (16 MiB on v5e)
    # would be exceeded (double-buffered x/y tiles + resident W/b). ---
    itm = lambda dt: np.dtype(dt).itemsize
    est = 2 * (tb * K * itm(stream_dtype) + tb * O * itm(out_dtype)
               + O * K * itm(stream_dtype) + O * 4) + (1 << 20)
    vmem_limit = int(min(est + (4 << 20), 48 << 20)) if est > (12 << 20) else None

    y = pl.pallas_call(
        functools.partial(linear_act_kernel, activation=activation),
        out_shape=jax.ShapeDtypeStruct((B, O), out_dtype),
        grid_spec=pltpu.PrefetchScalarGridSpec(
            num_scalar_prefetch=0,
            grid=grid,
            in_specs=[
                pl.BlockSpec(memory_space=pltpu.MemorySpace.SMEM),  # inv_sigma
                pl.BlockSpec((tb, K), lambda i: (i, 0)),            # x row tiles
                pl.BlockSpec((O, K), lambda i: (0, 0)),             # resident W_bar
                pl.BlockSpec((1, O), lambda i: (0, 0)),             # resident bias
            ],
            out_specs=pl.BlockSpec((tb, O), lambda i: (i, 0)),
        ),
        compiler_params=pltpu.CompilerParams(
            dimension_semantics=("parallel",),   # shard row tiles across TCs
            vmem_limit_bytes=vmem_limit,
        ),
    )(inv_sigma, x_s, w_s, b_s)

    return y, u_new


# ---------------------------------------------------------------------------
def reference(x, weight_bar, bias, u, norm, activation):
    """Pure-JAX f32 reference of the same forward (correctness check)."""
    eps = 1e-12
    w = weight_bar
    u_new = None
    if norm == "sn":
        v = w.T @ u
        v = v / (jnp.linalg.norm(v) + eps)
        u_new = w @ v
        u_new = u_new / (jnp.linalg.norm(u_new) + eps)
        sigma = u_new @ (w @ v)
        w = weight_bar / sigma
    y = x @ w.T + bias.reshape(1, -1)
    if activation == "relu":
        y = jnp.maximum(y, 0.0)
    elif activation == "lrelu":
        y = jnp.where(y >= 0.0, y, 0.2 * y)
    elif activation == "tanh":
        y = jnp.tanh(y)
    elif activation == "selu":
        y = _SELU_SCALE * jnp.where(y >= 0.0, y, _SELU_ALPHA * jnp.expm1(y))
    return y, u_new


if __name__ == "__main__":
    key = jax.random.PRNGKey(0)
    k_x, k_w, k_b, k_u = jax.random.split(key, 4)

    # B deliberately NOT a multiple of the row tile -> exercises the ragged
    # last block (no pad / slice copies in the wrapper).
    B, IN_DIM, OUT_DIM = 1000, 96, 128

    x = jax.random.normal(k_x, (B, IN_DIM), dtype=jnp.float32)
    w_bar = jax.random.normal(k_w, (OUT_DIM, IN_DIM), dtype=jnp.float32) * 0.05
    bias = jax.random.normal(k_b, (OUT_DIM,), dtype=jnp.float32) * 0.1
    u0 = jax.random.normal(k_u, (OUT_DIM,), dtype=jnp.float32)
    u0 = u0 / (jnp.linalg.norm(u0) + 1e-12)

    # --- norm='sn' + relu, default bf16 streaming (perf config) ---
    y_sn, u_new = linear_block_forward(x, w_bar, bias, u0,
                                       norm="sn", activation="relu")
    y_sn = jax.block_until_ready(y_sn)
    y_ref, u_ref = reference(x, w_bar, bias, u0, "sn", "relu")
    assert y_sn.shape == (B, OUT_DIM), y_sn.shape
    assert u_new.shape == (OUT_DIM,), u_new.shape
    assert jnp.allclose(u_new, u_ref, rtol=1e-5, atol=1e-5)
    err = float(jnp.max(jnp.abs(y_sn - y_ref)))
    assert jnp.allclose(y_sn, y_ref, rtol=2e-2, atol=2e-2), err

    # --- norm='sn' + lrelu, f32 streaming (tight numerical check) ---
    y2, _ = linear_block_forward(x, w_bar, bias, u0, norm="sn",
                                 activation="lrelu", stream_dtype=jnp.float32)
    y2 = jax.block_until_ready(y2)
    y2_ref, _ = reference(x, w_bar, bias, u0, "sn", "lrelu")
    err2 = float(jnp.max(jnp.abs(y2 - y2_ref)))
    assert jnp.allclose(y2, y2_ref, rtol=2e-3, atol=2e-3), err2

    # --- norm='none' (plain nn.Linear) + tanh, f32 streaming ---
    y3, u3 = linear_block_forward(x, w_bar, bias, None, norm="none",
                                  activation="tanh", stream_dtype=jnp.float32)
    y3 = jax.block_until_ready(y3)
    y3_ref, _ = reference(x, w_bar, bias, u0, "none", "tanh")
    assert u3 is None
    err3 = float(jnp.max(jnp.abs(y3 - y3_ref)))
    assert jnp.allclose(y3, y3_ref, rtol=2e-3, atol=2e-3), err3

    print("KERNEL_OK")
</pallas_src>

<mosaic_0001>
module attributes {stable_mosaic.version = 11 : i64} {
  func.func @linear_act_kernel(%arg0: i32, %arg1: memref<1xf32, #tpu.memory_space<smem>>, %arg2: memref<512x96xbf16, #tpu.memory_space<vmem>>, %arg3: memref<128x96xbf16, #tpu.memory_space<vmem>>, %arg4: memref<1x128xf32, #tpu.memory_space<vmem>>, %arg5: memref<512x128xf32, #tpu.memory_space<vmem>>) attributes {dimension_semantics = [#tpu.dimension_semantics<parallel>], iteration_bounds = array<i64: 2>, scalar_prefetch = 0 : i64, scratch_operands = 0 : i64, tpu.core_type = #tpu.core_type<tc>, window_params = [{transform_indices = @transform_0, window_bounds = array<i64: 1>}, {transform_indices = @transform_1, window_bounds = array<i64: 512, 96>}, {pipeline_mode = #tpu.pipeline_mode<synchronous>, transform_indices = @transform_2, window_bounds = array<i64: 128, 96>}, {pipeline_mode = #tpu.pipeline_mode<synchronous>, transform_indices = @transform_3, window_bounds = array<i64: 1, 128>}, {transform_indices = @transform_4, window_bounds = array<i64: 512, 128>}]} {
    %c0 = arith.constant 0 : index
    %c0_0 = arith.constant 0 : index
    %0 = vector.load %arg2[%c0, %c0_0] : memref<512x96xbf16, #tpu.memory_space<vmem>>, vector<512x96xbf16>
    %c0_1 = arith.constant 0 : index
    %c0_2 = arith.constant 0 : index
    %1 = vector.load %arg3[%c0_1, %c0_2] : memref<128x96xbf16, #tpu.memory_space<vmem>>, vector<128x96xbf16>
    %cst = arith.constant dense<0.000000e+00> : vector<512x128xf32>
    %2 = tpu.matmul %0, %1, %cst {dimension_numbers = #tpu.dot_dimension_numbers<[1], [1], [0], [0], [0, 0, 1, 0], [], []>} : vector<512x96xbf16>, vector<128x96xbf16>, vector<512x128xf32> -> vector<512x128xf32>
    %c0_3 = arith.constant 0 : index
    %3 = memref.load %arg1[%c0_3] : memref<1xf32, #tpu.memory_space<smem>>
    %4 = vector.broadcast %3 : f32 to vector<512x128xf32>
    %5 = arith.mulf %2, %4 : vector<512x128xf32>
    %c0_4 = arith.constant 0 : index
    %c0_5 = arith.constant 0 : index
    %6 = vector.load %arg4[%c0_4, %c0_5] : memref<1x128xf32, #tpu.memory_space<vmem>>, vector<1x128xf32>
    %7 = vector.broadcast %6 : vector<1x128xf32> to vector<512x128xf32>
    %8 = arith.addf %5, %7 : vector<512x128xf32>
    %cst_6 = arith.constant 0.000000e+00 : f32
    %9 = vector.broadcast %cst_6 : f32 to vector<512x128xf32>
    %10 = arith.maximumf %8, %9 : vector<512x128xf32>
    %c0_7 = arith.constant 0 : index
    %c0_8 = arith.constant 0 : index
    %11 = vector.load %arg5[%c0_7, %c0_8] : memref<512x128xf32, #tpu.memory_space<vmem>>, vector<512x128xf32>
    tpu.vector_store %arg5[%c0_7, %c0_8], %10 {strides = array<i32>} : memref<512x128xf32, #tpu.memory_space<vmem>>, vector<512x128xf32>,
    return
  }
  func.func @transform_0(%arg0: i32) -> i32 {
    %c0_i32 = arith.constant 0 : i32
    %c0_i32_0 = arith.constant 0 : i32
    return %c0_i32 : i32
  }
  func.func @transform_1(%arg0: i32) -> (i32, i32) {
    %c0_i32 = arith.constant 0 : i32
    %c0_i32_0 = arith.constant 0 : i32
    return %arg0, %c0_i32 : i32, i32
  }
  func.func @transform_2(%arg0: i32) -> (i32, i32) {
    %c0_i32 = arith.constant 0 : i32
    %c0_i32_0 = arith.constant 0 : i32
    %c0_i32_1 = arith.constant 0 : i32
    return %c0_i32, %c0_i32_0 : i32, i32
  }
  func.func @transform_3(%arg0: i32) -> (i32, i32) {
    %c0_i32 = arith.constant 0 : i32
    %c0_i32_0 = arith.constant 0 : i32
    %c0_i32_1 = arith.constant 0 : i32
    return %c0_i32, %c0_i32_0 : i32, i32
  }
  func.func @transform_4(%arg0: i32) -> (i32, i32) {
    %c0_i32 = arith.constant 0 : i32
    %c0_i32_0 = arith.constant 0 : i32
    return %arg0, %c0_i32 : i32, i32
  }
}

</mosaic_0001>

<bundles_post_ra>
// kernel: tpu_custom_call.1
= control target key start
LH: loop header
LB: loop body
LE: loop exit
PB: predicated region body
PF: predicated region fallthrough
CT: control target
= control target key end

     0   :  { %s2113_s0 = inlined_call_operand.<no memory space> [shape: f32[1], index: 0, kind: input, shape index: {}]   ;;  %s2114_s1 = inlined_call_operand.vmem [shape: bf16[1000,96], index: 1, kind: input, shape index: {}]   ;;  %s2115_s2 = inlined_call_operand.vmem [shape: bf16[128,96], index: 2, kind: input, shape index: {}]   ;;  %s2116_s3 = inlined_call_operand.vmem [shape: f32[1,128], index: 3, kind: input, shape index: {}]   ;;  %s2117_s4 = inlined_call_operand.hbm [shape: f32[1000,128], index: 4, kind: output, shape index: {}]  }
   0x1   :  { %9 = sst [smem:[#allocation2]] %s2113_s0 }
   0x2   :  { %10 = vsyncpa [#allocation4], 0 }
   0x3   :  { %12 = vsyncpa [#allocation4 + $0x1], 0  ;;  %s1677_s17 = smov 0   ;;  %s1679_s18 = smov 0  }
   0x4   :  { %s1681_s19 = smov 0   ;;  %s1683_s20 = smov 0  }
   0x5 LB: > { %s1698_s0 = sadd.s32 4294967295, %s1644_s20   ;;  %s1262_s21 = sadd.s32 4294967294, %s1644_s20   ;;  %s1644_s20 = sphi %s1683_s20, %s2123_s20   ;;  %s1640_s19 = sphi %s1681_s19, %s2122_s19   ;;  %s1636_s18 = sphi %s1679_s18, %s2121_s18   ;;  %s1632_s17 = sphi %s1677_s17, %s2120_s17  }
   0x6   : > { %s1702_s22 = sadd.s32 1, %s1644_s20   ;;  %s114_s23 = sadd.s32 1, %s1640_s19 }
   0x7   : > { %s111_s24 = ssub.s32 %s1644_s20, %s1702_s22  ;;  %p124_p0 = scmp.ne.s32.totalorder %s1640_s19, %s1636_s18 }
   0x8   : > { %p112_p1 = scmp.eq.s32.totalorder %s111_s24, 0  ;;  %p125_p2 = scmp.eq.s32.totalorder %s1698_s0, 1 }
   0x9   : > { %p130_p3 = scmp.ne.s32.totalorder %s1636_s18, %s1632_s17  ;;  %p131_p4 = scmp.eq.s32.totalorder %s1262_s21, 1 }
   0xa   : > { %s1713_s25 = scalar_select %p112_p1, %s1640_s19, %s114_s23  }
   0xb   : > { %p1715_p5 = por %p125_p2, %p124_p0  ;;  %p1719_p6 = por %p131_p4, %p130_p3 }
   0xc   : > { %p1265_p7 = scmp.ge.s32.totalorder %s1644_s20, 1  ;;  %p175_p8 = scmp.lt.s32.totalorder %s1644_s20, 3 }
   0xe   : > { %p176_p9 = pnand %p1265_p7, %p175_p8 }
   0xf   : > { %s1737_s6 = sshll.u32 (!%p176_p9), %s1698_s0, 6  ;;  %s202_s7 = sand.u32 (!%p176_p9), 1, %s1636_s18  }
  0x10   : > { %179 = sbr.rel (%p176_p9) target bundleno = 375 (0x177), region = 36  ;;  %p210_p10 = scmp.lt.s32.totalorder (!%p176_p9), %s1737_s6, 124 }
  0x11   : > { %s915_s8 = sld [smem:[#allocation2]] (!%p176_p9)  ;;  %s1266_s11 = sshll.u32 (!%p176_p9), %s202_s7, 9 }
  0x12   : > { %s1867_s12 = scalar_lea.vmem (!%p176_p9), [#allocation3], %s1266_s11 }
  0x15   : > { %v1544_v0 = vld [vmem:[%s2115_s2 + $0x38] sm:$0xff]   ;;  %vm505_vm0 = vcmask 785408   ;;  %v1545_v1 = vld [vmem:[%s2115_s2 + $0x30] sm:$0xff]   ;;  %v1546_v4 = vld [vmem:[%s2115_s2 + $0x28] sm:$0xff]   ;;  %s211_s9 = scalar_select %p210_p10, %s1737_s6, 124 }
  0x16   : > { %1488 = vmatprep.subr.msk.bf16.mxu0 %vm505_vm0, %v1544_v0  ;;  %1489 = vmatprep.subr.msk.bf16.mxu1 %vm505_vm0, %v1544_v0  ;;  %v624_v2 = vsel %vm505_vm0, %v1544_v0, 0  ;;  %v621_v3 = vsel %vm505_vm0, %v1545_v1, 0  ;;  %v618_v7 = vsel %vm505_vm0, %v1546_v4, 0  ;;  %v1547_v8 = vld [vmem:[%s2115_s2 + $0x20] sm:$0xff]   ;;  %v1548_v10 = vld [vmem:[%s2115_s2 + $0x18] sm:$0xff]   ;;  %v1549_v12 = vld [vmem:[%s2115_s2 + $0x10] sm:$0xff]  }
  0x17   : > { %1393 = vmatpush3.bf16.xpose.msra.mxu0 %v624_v2  ;;  %1480 = vmatpush3.bf16.xpose.msra.mxu1 %v624_v2  ;;  %s1268_s10 = sshll.u32 %s211_s9, 2  ;;  %v615_v9 = vsel %vm505_vm0, %v1547_v8, 0  ;;  %v612_v11 = vsel %vm505_vm0, %v1548_v10, 0  ;;  %v609_v13 = vsel %vm505_vm0, %v1549_v12, 0  ;;  %v1550_v14 = vld [vmem:[%s2115_s2 + $0x8] sm:$0xff]   ;;  %v1551_v16 = vld [vmem:[%s2115_s2] sm:$0xff]   ;;  %v1848_v48 = vstv %s915_s8 }
  0x18   : > { %1490 = vmatprep.subr.msk.bf16.mxu0 %vm505_vm0, %v1545_v1  ;;  %1491 = vmatprep.subr.msk.bf16.mxu1 %vm505_vm0, %v1545_v1  ;;  %s1750_s13 = scalar_lea.vmem %s2114_s1, %s1268_s10  ;;  %v606_v15 = vsel %vm505_vm0, %v1550_v14, 0  ;;  %v603_v17 = vsel %vm505_vm0, %v1551_v16, 0  ;;  %v1853_v50 = vld [vmem:[%s2116_s3] ss:$0 sm:$0xff]  ;;  %s1189_s14 = ssub.s32 (%p1715_p5), 125, %s1737_s6 }
  0x19   : > { %v1552_v5 = vld [vmem:[%s1750_s13] sm:$0xff]   ;;  %v1554_v18 = vld [vmem:[%s1750_s13 + $0x8] sm:$0xff]   ;;  %v1556_v20 = vld [vmem:[%s1750_s13 + $0x10] sm:$0xff]   ;;  %p1190_p11 = scmp.lt.s32.totalorder (%p1715_p5), %s1189_s14, 64 }
  0x1a   : > { %v1553_v6 = vld [vmem:[%s1750_s13 + $0x80] sm:$0xff]   ;;  %1408 = vmatprep.mubr.msk.bf16.mxu0 %vm505_vm0, %v1552_v5  ;;  %v1555_v19 = vld [vmem:[%s1750_s13 + $0x88] sm:$0xff]   ;;  %v1557_v21 = vld [vmem:[%s1750_s13 + $0x90] sm:$0xff]  }
  0x1b   : > { %1440 = vmatprep.mubr.msk.bf16.mxu1 %vm505_vm0, %v1553_v6  ;;  %v1558_v22 = vld [vmem:[%s1750_s13 + $0x18] sm:$0xff]   ;;  %v1560_v24 = vld [vmem:[%s1750_s13 + $0x20] sm:$0xff]   ;;  %v1562_v26 = vld [vmem:[%s1750_s13 + $0x28] sm:$0xff]  }
  0x1c   : > { %v1559_v23 = vld [vmem:[%s1750_s13 + $0x98] sm:$0xff]   ;;  %v1561_v25 = vld [vmem:[%s1750_s13 + $0xa0] sm:$0xff]   ;;  %v1563_v27 = vld [vmem:[%s1750_s13 + $0xa8] sm:$0xff]  }
  0x1d   : > { %v1564_v28 = vld [vmem:[%s1750_s13 + $0x30] sm:$0xff]   ;;  %v1566_v30 = vld [vmem:[%s1750_s13 + $0x38] sm:$0xff]   ;;  %v1568_v32 = vld [vmem:[%s1750_s13 + $0x40] sm:$0xff]  }
  0x1e   : > { %v1565_v29 = vld [vmem:[%s1750_s13 + $0xb0] sm:$0xff]   ;;  %v1567_v31 = vld [vmem:[%s1750_s13 + $0xb8] sm:$0xff]   ;;  %v1569_v33 = vld [vmem:[%s1750_s13 + $0xc0] sm:$0xff]  }
  0x1f   : > { %1395 = vmatpush3.bf16.xpose.msra.mxu0 %v621_v3  ;;  %1481 = vmatpush3.bf16.xpose.msra.mxu1 %v621_v3  ;;  %v1570_v34 = vld [vmem:[%s1750_s13 + $0x48] sm:$0xff]   ;;  %v1572_v36 = vld [vmem:[%s1750_s13 + $0x50] sm:$0xff]   ;;  %v1574_v38 = vld [vmem:[%s1750_s13 + $0x58] sm:$0xff]  }
  0x20   : > { %1492 = vmatprep.subr.msk.bf16.mxu0 %vm505_vm0, %v1546_v4  ;;  %1493 = vmatprep.subr.msk.bf16.mxu1 %vm505_vm0, %v1546_v4  ;;  %v1571_v35 = vld [vmem:[%s1750_s13 + $0xc8] sm:$0xff]   ;;  %v1573_v37 = vld [vmem:[%s1750_s13 + $0xd0] sm:$0xff]   ;;  %v1575_v39 = vld [vmem:[%s1750_s13 + $0xd8] sm:$0xff]  }
  0x21   : > { %v1576_v40 = vld [vmem:[%s1750_s13 + $0x60] sm:$0xff]   ;;  %v1578_v42 = vld [vmem:[%s1750_s13 + $0x68] sm:$0xff]   ;;  %v1580_v44 = vld [vmem:[%s1750_s13 + $0x70] sm:$0xff]  }
  0x22   : > { %v1577_v41 = vld [vmem:[%s1750_s13 + $0xe0] sm:$0xff]   ;;  %v1579_v43 = vld [vmem:[%s1750_s13 + $0xe8] sm:$0xff]   ;;  %v1581_v45 = vld [vmem:[%s1750_s13 + $0xf0] sm:$0xff]  }
  0x23   : > { %v1582_v46 = vld [vmem:[%s1750_s13 + $0x78] sm:$0xff]  }
  0x24   : > { %v1583_v47 = vld [vmem:[%s1750_s13 + $0xf8] sm:$0xff]   ;;  %s2053_s13 = scalar_lea.sflag [#allocation4], %s202_s7 }
  0x27   : > { %1397 = vmatpush3.bf16.xpose.msra.mxu0 %v618_v7  ;;  %1482 = vmatpush3.bf16.xpose.msra.mxu1 %v618_v7 }
  0x28   : > { %1494 = vmatprep.subr.msk.bf16.mxu0 %vm505_vm0, %v1547_v8  ;;  %1495 = vmatprep.subr.msk.bf16.mxu1 %vm505_vm0, %v1547_v8 }
  0x2f   : > { %1399 = vmatpush3.bf16.xpose.msra.mxu0 %v615_v9  ;;  %1483 = vmatpush3.bf16.xpose.msra.mxu1 %v615_v9 }
  0x30   : > { %1496 = vmatprep.subr.msk.bf16.mxu0 %vm505_vm0, %v1548_v10  ;;  %1497 = vmatprep.subr.msk.bf16.mxu1 %vm505_vm0, %v1548_v10 }
  0x37   : > { %1401 = vmatpush3.bf16.xpose.msra.mxu0 %v612_v11  ;;  %1484 = vmatpush3.bf16.xpose.msra.mxu1 %v612_v11 }
  0x38   : > { %1498 = vmatprep.subr.msk.bf16.mxu0 %vm505_vm0, %v1549_v12  ;;  %1499 = vmatprep.subr.msk.bf16.mxu1 %vm505_vm0, %v1549_v12 }
  0x3f   : > { %1403 = vmatpush3.bf16.xpose.msra.mxu0 %v609_v13  ;;  %1485 = vmatpush3.bf16.xpose.msra.mxu1 %v609_v13 }
  0x40   : > { %1500 = vmatprep.subr.msk.bf16.mxu0 %vm505_vm0, %v1550_v14  ;;  %1501 = vmatprep.subr.msk.bf16.mxu1 %vm505_vm0, %v1550_v14 }
  0x47   : > { %1405 = vmatpush3.bf16.xpose.msra.mxu0 %v606_v15  ;;  %1486 = vmatpush3.bf16.xpose.msra.mxu1 %v606_v15 }
  0x48   : > { %1502 = vmatprep.subr.msk.bf16.mxu0 %vm505_vm0, %v1551_v16  ;;  %1503 = vmatprep.subr.msk.bf16.mxu1 %vm505_vm0, %v1551_v16 }
  0x4f   : > { %1407 = vmatpush3.bf16.xpose.msra.mxu0 %v603_v17  ;;  %1487 = vmatpush3.bf16.xpose.msra.mxu1 %v603_v17 }
  0x56   : > { %1409 = vmatmul.mubr.msk.bf16.vlgmr.msra.gmra.mxu0 %vm505_vm0, %v1554_v18  ;;  %1441 = vmatmul.mubr.msk.bf16.vlgmr.msra.gmra.mxu1 %vm505_vm0, %v1555_v19 }
  0x57   : > { %1412 = vmatprep.mubr.msk.bf16.mxu0 %vm505_vm0, %v1556_v20  ;;  %1444 = vmatprep.mubr.msk.bf16.mxu1 %vm505_vm0, %v1557_v21 }
  0x5e   : > { %1413 = vmatmul.mubr.msk.bf16.gmra.mxu0 %vm505_vm0, %v1558_v22  ;;  %1445 = vmatmul.mubr.msk.bf16.gmra.mxu1 %vm505_vm0, %v1559_v23 }
  0x5f   : > { %1416 = vmatprep.mubr.msk.bf16.mxu0 %vm505_vm0, %v1560_v24  ;;  %1448 = vmatprep.mubr.msk.bf16.mxu1 %vm505_vm0, %v1561_v25 }
  0x66   : > { %1417 = vmatmul.mubr.msk.bf16.gmra.mxu0 %vm505_vm0, %v1562_v26  ;;  %1449 = vmatmul.mubr.msk.bf16.gmra.mxu1 %vm505_vm0, %v1563_v27 }
  0x67   : > { %1420 = vmatprep.mubr.msk.bf16.mxu0 %vm505_vm0, %v1564_v28  ;;  %1452 = vmatprep.mubr.msk.bf16.mxu1 %vm505_vm0, %v1565_v29 }
  0x6e   : > { %1421 = vmatmul.mubr.msk.bf16.gmra.mxu0 %vm505_vm0, %v1566_v30  ;;  %1453 = vmatmul.mubr.msk.bf16.gmra.mxu1 %vm505_vm0, %v1567_v31 }
  0x6f   : > { %1424 = vmatprep.mubr.msk.bf16.mxu0 %vm505_vm0, %v1568_v32  ;;  %1456 = vmatprep.mubr.msk.bf16.mxu1 %vm505_vm0, %v1569_v33 }
  0x76   : > { %1425 = vmatmul.mubr.msk.bf16.gmra.mxu0 %vm505_vm0, %v1570_v34  ;;  %1457 = vmatmul.mubr.msk.bf16.gmra.mxu1 %vm505_vm0, %v1571_v35 }
  0x77   : > { %1428 = vmatprep.mubr.msk.bf16.mxu0 %vm505_vm0, %v1572_v36  ;;  %1460 = vmatprep.mubr.msk.bf16.mxu1 %vm505_vm0, %v1573_v37 }
  0x7e   : > { %1429 = vmatmul.mubr.msk.bf16.gmra.mxu0 %vm505_vm0, %v1574_v38  ;;  %1461 = vmatmul.mubr.msk.bf16.gmra.mxu1 %vm505_vm0, %v1575_v39 }
  0x7f   : > { %1432 = vmatprep.mubr.msk.bf16.mxu0 %vm505_vm0, %v1576_v40  ;;  %1464 = vmatprep.mubr.msk.bf16.mxu1 %vm505_vm0, %v1577_v41 }
  0x86   : > { %1433 = vmatmul.mubr.msk.bf16.gmra.mxu0 %vm505_vm0, %v1578_v42  ;;  %1465 = vmatmul.mubr.msk.bf16.gmra.mxu1 %vm505_vm0, %v1579_v43 }
  0x87   : > { %1436 = vmatprep.mubr.msk.bf16.mxu0 %vm505_vm0, %v1580_v44  ;;  %1468 = vmatprep.mubr.msk.bf16.mxu1 %vm505_vm0, %v1581_v45 }
  0x8e   : > { %1437 = vmatmul.mubr.msk.bf16.gmra.mxu0 %vm505_vm0, %v1582_v46  ;;  %1469 = vmatmul.mubr.msk.bf16.gmra.mxu1 %vm505_vm0, %v1583_v47 }
 0x116   : > { %v1410_v49 = vpop.f32.mrf.mxu0  ;;  %v1442_v51 = vpop.f32.mrf.mxu1 }
 0x117   : > { %v919_v52 = vmul.f32 %v1410_v49, %v1848_v48  ;;  %v951_v53 = vmul.f32 %v1442_v51, %v1848_v48 }
 0x118   : > { %v660_v54 = vpop.f32.mrf.mxu0  ;;  %v788_v55 = vpop.f32.mrf.mxu1 }
 0x119   : > { %v990_v56 = vadd.f32 %v1853_v50, %v919_v52  ;;  %v1022_v57 = vadd.f32 %v1853_v50, %v951_v53  ;;  %v917_v58 = vmul.f32 %v1848_v48, %v660_v54  ;;  %v949_v59 = vmul.f32 %v1848_v48, %v788_v55 }
 0x11a   : > { %v1411_v60 = vpop.f32.mrf.mxu0  ;;  %v1443_v61 = vpop.f32.mrf.mxu1 }
 0x11b   : > { %v1054_v62 = vmax.f32 %v990_v56, 0.0  ;;  %v1086_v63 = vmax.f32 %v1022_v57, 0.0  ;;  %v988_v0 = vadd.f32 %v1853_v50, %v917_v58  ;;  %v1020_v1 = vadd.f32 %v1853_v50, %v949_v59 }
 0x11c   : > { %v920_v2 = vmul.f32 %v1411_v60, %v1848_v48  ;;  %v952_v3 = vmul.f32 %v1443_v61, %v1848_v48  ;;  %v663_v4 = vpop.f32.mrf.mxu0  ;;  %v791_v5 = vpop.f32.mrf.mxu1 }
 0x11d   : > { %1118 = vst [vmem:[%s1867_s12 + $0x10] sm:$0xff] %v1054_v62  ;;  %1150 = vst [vmem:[%s1867_s12 + $0x110] sm:$0xff] %v1086_v63  ;;  %v1052_v6 = vmax.f32 %v988_v0, 0.0  ;;  %v1084_v7 = vmax.f32 %v1020_v1, 0.0  ;;  %v918_v8 = vmul.f32 %v1848_v48, %v663_v4  ;;  %v950_v9 = vmul.f32 %v1848_v48, %v791_v5 }
 0x11e   : > { %v991_v10 = vadd.f32 %v1853_v50, %v920_v2  ;;  %v1023_v11 = vadd.f32 %v1853_v50, %v952_v3  ;;  %v1414_v12 = vpop.f32.mrf.mxu0  ;;  %v1446_v13 = vpop.f32.mrf.mxu1 }
 0x11f   : > { %1116 = vst [vmem:[%s1867_s12] sm:$0xff] %v1052_v6  ;;  %1148 = vst [vmem:[%s1867_s12 + $0x100] sm:$0xff] %v1084_v7  ;;  %v989_v14 = vadd.f32 %v1853_v50, %v918_v8  ;;  %v1021_v15 = vadd.f32 %v1853_v50, %v950_v9  ;;  %v923_v16 = vmul.f32 %v1414_v12, %v1848_v48 }
 0x120   : > { %v955_v17 = vmul.f32 %v1446_v13, %v1848_v48  ;;  %v1055_v18 = vmax.f32 %v991_v10, 0.0  ;;  %v1087_v19 = vmax.f32 %v1023_v11, 0.0  ;;  %v676_v20 = vpop.f32.mrf.mxu0  ;;  %v804_v21 = vpop.f32.mrf.mxu1 }
 0x121   : > { %v1053_v22 = vmax.f32 %v989_v14, 0.0  ;;  %v1085_v23 = vmax.f32 %v1021_v15, 0.0  ;;  %v994_v24 = vadd.f32 %v1853_v50, %v923_v16  ;;  %v921_v26 = vmul.f32 %v1848_v48, %v676_v20 }
 0x122   : > { %v1026_v25 = vadd.f32 %v1853_v50, %v955_v17  ;;  %1119 = vst [vmem:[%s1867_s12 + $0x18] sm:$0xff] %v1055_v18  ;;  %1151 = vst [vmem:[%s1867_s12 + $0x118] sm:$0xff] %v1087_v19  ;;  %v953_v27 = vmul.f32 %v1848_v48, %v804_v21  ;;  %v1415_v28 = vpop.f32.mrf.mxu0  ;;  %v1447_v29 = vpop.f32.mrf.mxu1 }
 0x123   : > { %1117 = vst [vmem:[%s1867_s12 + $0x8] sm:$0xff] %v1053_v22  ;;  %1149 = vst [vmem:[%s1867_s12 + $0x108] sm:$0xff] %v1085_v23  ;;  %v1058_v30 = vmax.f32 %v994_v24, 0.0  ;;  %v924_v32 = vmul.f32 %v1415_v28, %v1848_v48  ;;  %v956_v33 = vmul.f32 %v1447_v29, %v1848_v48  ;;  %v992_v34 = vadd.f32 %v1853_v50, %v921_v26 }
 0x124   : > { %v1090_v31 = vmax.f32 %v1026_v25, 0.0  ;;  %v1024_v35 = vadd.f32 %v1853_v50, %v953_v27  ;;  %v679_v36 = vpop.f32.mrf.mxu0  ;;  %v807_v37 = vpop.f32.mrf.mxu1 }
 0x125   : > { %1122 = vst [vmem:[%s1867_s12 + $0x30] sm:$0xff] %v1058_v30  ;;  %v995_v38 = vadd.f32 %v1853_v50, %v924_v32  ;;  %v1027_v39 = vadd.f32 %v1853_v50, %v956_v33  ;;  %v922_v40 = vmul.f32 %v1848_v48, %v679_v36  ;;  %v954_v41 = vmul.f32 %v1848_v48, %v807_v37 }
 0x126   : > { %1154 = vst [vmem:[%s1867_s12 + $0x130] sm:$0xff] %v1090_v31  ;;  %v1056_v42 = vmax.f32 %v992_v34, 0.0  ;;  %v1088_v43 = vmax.f32 %v1024_v35, 0.0  ;;  %v1418_v44 = vpop.f32.mrf.mxu0  ;;  %v1450_v45 = vpop.f32.mrf.mxu1 }
 0x127   : > { %v1059_v46 = vmax.f32 %v995_v38, 0.0  ;;  %v1091_v47 = vmax.f32 %v1027_v39, 0.0  ;;  %v993_v49 = vadd.f32 %v1853_v50, %v922_v40  ;;  %v1025_v51 = vadd.f32 %v1853_v50, %v954_v41 }
 0x128   : > { %1120 = vst [vmem:[%s1867_s12 + $0x20] sm:$0xff] %v1056_v42  ;;  %1152 = vst [vmem:[%s1867_s12 + $0x120] sm:$0xff] %v1088_v43  ;;  %v927_v52 = vmul.f32 %v1418_v44, %v1848_v48  ;;  %v959_v53 = vmul.f32 %v1450_v45, %v1848_v48  ;;  %v692_v54 = vpop.f32.mrf.mxu0  ;;  %v820_v55 = vpop.f32.mrf.mxu1 }
 0x129   : > { %1123 = vst [vmem:[%s1867_s12 + $0x38] sm:$0xff] %v1059_v46  ;;  %1155 = vst [vmem:[%s1867_s12 + $0x138] sm:$0xff] %v1091_v47  ;;  %v1057_v56 = vmax.f32 %v993_v49, 0.0  ;;  %v1089_v57 = vmax.f32 %v1025_v51, 0.0  ;;  %v925_v58 = vmul.f32 %v1848_v48, %v692_v54  ;;  %v957_v59 = vmul.f32 %v1848_v48, %v820_v55 }
 0x12a   : > { %v998_v60 = vadd.f32 %v1853_v50, %v927_v52  ;;  %v1030_v61 = vadd.f32 %v1853_v50, %v959_v53  ;;  %v1419_v62 = vpop.f32.mrf.mxu0  ;;  %v1451_v63 = vpop.f32.mrf.mxu1 }
 0x12b   : > { %1121 = vst [vmem:[%s1867_s12 + $0x28] sm:$0xff] %v1057_v56  ;;  %1153 = vst [vmem:[%s1867_s12 + $0x128] sm:$0xff] %v1089_v57  ;;  %v996_v0 = vadd.f32 %v1853_v50, %v925_v58  ;;  %v1028_v1 = vadd.f32 %v1853_v50, %v957_v59  ;;  %v928_v2 = vmul.f32 %v1419_v62, %v1848_v48 }
 0x12c   : > { %v960_v3 = vmul.f32 %v1451_v63, %v1848_v48  ;;  %v1062_v4 = vmax.f32 %v998_v60, 0.0  ;;  %v1094_v5 = vmax.f32 %v1030_v61, 0.0  ;;  %v695_v6 = vpop.f32.mrf.mxu0  ;;  %v823_v7 = vpop.f32.mrf.mxu1 }
 0x12d   : > { %v1060_v8 = vmax.f32 %v996_v0, 0.0  ;;  %v1092_v9 = vmax.f32 %v1028_v1, 0.0  ;;  %v999_v10 = vadd.f32 %v1853_v50, %v928_v2  ;;  %v926_v12 = vmul.f32 %v1848_v48, %v695_v6 }
 0x12e   : > { %v1031_v11 = vadd.f32 %v1853_v50, %v960_v3  ;;  %1126 = vst [vmem:[%s1867_s12 + $0x50] sm:$0xff] %v1062_v4  ;;  %1158 = vst [vmem:[%s1867_s12 + $0x150] sm:$0xff] %v1094_v5  ;;  %v958_v13 = vmul.f32 %v1848_v48, %v823_v7  ;;  %v1422_v14 = vpop.f32.mrf.mxu0  ;;  %v1454_v15 = vpop.f32.mrf.mxu1 }
 0x12f   : > { %1124 = vst [vmem:[%s1867_s12 + $0x40] sm:$0xff] %v1060_v8  ;;  %1156 = vst [vmem:[%s1867_s12 + $0x140] sm:$0xff] %v1092_v9  ;;  %v1063_v16 = vmax.f32 %v999_v10, 0.0  ;;  %v931_v18 = vmul.f32 %v1422_v14, %v1848_v48  ;;  %v963_v19 = vmul.f32 %v1454_v15, %v1848_v48  ;;  %v997_v20 = vadd.f32 %v1853_v50, %v926_v12 }
 0x130   : > { %v1095_v17 = vmax.f32 %v1031_v11, 0.0  ;;  %v1029_v21 = vadd.f32 %v1853_v50, %v958_v13  ;;  %v708_v22 = vpop.f32.mrf.mxu0  ;;  %v836_v23 = vpop.f32.mrf.mxu1 }
 0x131   : > { %1127 = vst [vmem:[%s1867_s12 + $0x58] sm:$0xff] %v1063_v16  ;;  %v1002_v24 = vadd.f32 %v1853_v50, %v931_v18  ;;  %v1034_v25 = vadd.f32 %v1853_v50, %v963_v19  ;;  %v929_v26 = vmul.f32 %v1848_v48, %v708_v22  ;;  %v961_v27 = vmul.f32 %v1848_v48, %v836_v23 }
 0x132   : > { %1159 = vst [vmem:[%s1867_s12 + $0x158] sm:$0xff] %v1095_v17  ;;  %v1061_v28 = vmax.f32 %v997_v20, 0.0  ;;  %v1093_v29 = vmax.f32 %v1029_v21, 0.0  ;;  %v1423_v30 = vpop.f32.mrf.mxu0  ;;  %v1455_v31 = vpop.f32.mrf.mxu1 }
 0x133   : > { %v1066_v32 = vmax.f32 %v1002_v24, 0.0  ;;  %v1098_v33 = vmax.f32 %v1034_v25, 0.0  ;;  %v1000_v34 = vadd.f32 %v1853_v50, %v929_v26  ;;  %v1032_v35 = vadd.f32 %v1853_v50, %v961_v27 }
 0x134   : > { %1125 = vst [vmem:[%s1867_s12 + $0x48] sm:$0xff] %v1061_v28  ;;  %1157 = vst [vmem:[%s1867_s12 + $0x148] sm:$0xff] %v1093_v29  ;;  %v932_v36 = vmul.f32 %v1423_v30, %v1848_v48  ;;  %v964_v37 = vmul.f32 %v1455_v31, %v1848_v48  ;;  %v711_v38 = vpop.f32.mrf.mxu0  ;;  %v839_v39 = vpop.f32.mrf.mxu1 }
 0x135   : > { %1130 = vst [vmem:[%s1867_s12 + $0x70] sm:$0xff] %v1066_v32  ;;  %1162 = vst [vmem:[%s1867_s12 + $0x170] sm:$0xff] %v1098_v33  ;;  %v1064_v40 = vmax.f32 %v1000_v34, 0.0  ;;  %v1096_v41 = vmax.f32 %v1032_v35, 0.0  ;;  %v930_v42 = vmul.f32 %v1848_v48, %v711_v38  ;;  %v962_v43 = vmul.f32 %v1848_v48, %v839_v39 }
 0x136   : > { %v1003_v44 = vadd.f32 %v1853_v50, %v932_v36  ;;  %v1035_v45 = vadd.f32 %v1853_v50, %v964_v37  ;;  %v1426_v46 = vpop.f32.mrf.mxu0  ;;  %v1458_v47 = vpop.f32.mrf.mxu1 }
 0x137   : > { %1128 = vst [vmem:[%s1867_s12 + $0x60] sm:$0xff] %v1064_v40  ;;  %1160 = vst [vmem:[%s1867_s12 + $0x160] sm:$0xff] %v1096_v41  ;;  %v1001_v49 = vadd.f32 %v1853_v50, %v930_v42  ;;  %v1033_v51 = vadd.f32 %v1853_v50, %v962_v43  ;;  %v935_v52 = vmul.f32 %v1426_v46, %v1848_v48 }
 0x138   : > { %v967_v53 = vmul.f32 %v1458_v47, %v1848_v48  ;;  %v1067_v54 = vmax.f32 %v1003_v44, 0.0  ;;  %v1099_v55 = vmax.f32 %v1035_v45, 0.0  ;;  %v724_v56 = vpop.f32.mrf.mxu0  ;;  %v852_v57 = vpop.f32.mrf.mxu1 }
 0x139   : > { %v1065_v58 = vmax.f32 %v1001_v49, 0.0  ;;  %v1097_v59 = vmax.f32 %v1033_v51, 0.0  ;;  %v1006_v60 = vadd.f32 %v1853_v50, %v935_v52  ;;  %v933_v62 = vmul.f32 %v1848_v48, %v724_v56 }
 0x13a   : > { %v1038_v61 = vadd.f32 %v1853_v50, %v967_v53  ;;  %1131 = vst [vmem:[%s1867_s12 + $0x78] sm:$0xff] %v1067_v54  ;;  %1163 = vst [vmem:[%s1867_s12 + $0x178] sm:$0xff] %v1099_v55  ;;  %v965_v63 = vmul.f32 %v1848_v48, %v852_v57  ;;  %v1427_v0 = vpop.f32.mrf.mxu0  ;;  %v1459_v1 = vpop.f32.mrf.mxu1 }
 0x13b   : > { %1129 = vst [vmem:[%s1867_s12 + $0x68] sm:$0xff] %v1065_v58  ;;  %1161 = vst [vmem:[%s1867_s12 + $0x168] sm:$0xff] %v1097_v59  ;;  %v1070_v2 = vmax.f32 %v1006_v60, 0.0  ;;  %v936_v4 = vmul.f32 %v1427_v0, %v1848_v48  ;;  %v968_v5 = vmul.f32 %v1459_v1, %v1848_v48  ;;  %v1004_v6 = vadd.f32 %v1853_v50, %v933_v62 }
 0x13c   : > { %v1102_v3 = vmax.f32 %v1038_v61, 0.0  ;;  %v1036_v7 = vadd.f32 %v1853_v50, %v965_v63  ;;  %v727_v8 = vpop.f32.mrf.mxu0  ;;  %v855_v9 = vpop.f32.mrf.mxu1 }
 0x13d   : > { %1134 = vst [vmem:[%s1867_s12 + $0x90] sm:$0xff] %v1070_v2  ;;  %v1007_v10 = vadd.f32 %v1853_v50, %v936_v4  ;;  %v1039_v11 = vadd.f32 %v1853_v50, %v968_v5  ;;  %v934_v12 = vmul.f32 %v1848_v48, %v727_v8  ;;  %v966_v13 = vmul.f32 %v1848_v48, %v855_v9 }
 0x13e   : > { %1166 = vst [vmem:[%s1867_s12 + $0x190] sm:$0xff] %v1102_v3  ;;  %v1068_v14 = vmax.f32 %v1004_v6, 0.0  ;;  %v1100_v15 = vmax.f32 %v1036_v7, 0.0  ;;  %v1430_v16 = vpop.f32.mrf.mxu0  ;;  %v1462_v17 = vpop.f32.mrf.mxu1 }
 0x13f   : > { %v1071_v18 = vmax.f32 %v1007_v10, 0.0  ;;  %v1103_v19 = vmax.f32 %v1039_v11, 0.0  ;;  %v1005_v20 = vadd.f32 %v1853_v50, %v934_v12  ;;  %v1037_v21 = vadd.f32 %v1853_v50, %v966_v13 }
 0x140   : > { %1132 = vst [vmem:[%s1867_s12 + $0x80] sm:$0xff] %v1068_v14  ;;  %1164 = vst [vmem:[%s1867_s12 + $0x180] sm:$0xff] %v1100_v15  ;;  %v939_v22 = vmul.f32 %v1430_v16, %v1848_v48  ;;  %v971_v23 = vmul.f32 %v1462_v17, %v1848_v48  ;;  %v740_v24 = vpop.f32.mrf.mxu0  ;;  %v868_v25 = vpop.f32.mrf.mxu1 }
 0x141   : > { %1135 = vst [vmem:[%s1867_s12 + $0x98] sm:$0xff] %v1071_v18  ;;  %1167 = vst [vmem:[%s1867_s12 + $0x198] sm:$0xff] %v1103_v19  ;;  %v1069_v26 = vmax.f32 %v1005_v20, 0.0  ;;  %v1101_v27 = vmax.f32 %v1037_v21, 0.0  ;;  %v937_v28 = vmul.f32 %v1848_v48, %v740_v24  ;;  %v969_v29 = vmul.f32 %v1848_v48, %v868_v25 }
 0x142   : > { %v1010_v30 = vadd.f32 %v1853_v50, %v939_v22  ;;  %v1042_v31 = vadd.f32 %v1853_v50, %v971_v23  ;;  %v1431_v32 = vpop.f32.mrf.mxu0  ;;  %v1463_v33 = vpop.f32.mrf.mxu1 }
 0x143   : > { %1133 = vst [vmem:[%s1867_s12 + $0x88] sm:$0xff] %v1069_v26  ;;  %1165 = vst [vmem:[%s1867_s12 + $0x188] sm:$0xff] %v1101_v27  ;;  %v1008_v34 = vadd.f32 %v1853_v50, %v937_v28  ;;  %v1040_v35 = vadd.f32 %v1853_v50, %v969_v29  ;;  %v940_v36 = vmul.f32 %v1431_v32, %v1848_v48 }
 0x144   : > { %v972_v37 = vmul.f32 %v1463_v33, %v1848_v48  ;;  %v1074_v38 = vmax.f32 %v1010_v30, 0.0  ;;  %v1106_v39 = vmax.f32 %v1042_v31, 0.0  ;;  %v743_v40 = vpop.f32.mrf.mxu0  ;;  %v871_v41 = vpop.f32.mrf.mxu1 }
 0x145   : > { %v1072_v42 = vmax.f32 %v1008_v34, 0.0  ;;  %v1104_v43 = vmax.f32 %v1040_v35, 0.0  ;;  %v1011_v44 = vadd.f32 %v1853_v50, %v940_v36  ;;  %v938_v46 = vmul.f32 %v1848_v48, %v743_v40 }
 0x146   : > { %v1043_v45 = vadd.f32 %v1853_v50, %v972_v37  ;;  %1138 = vst [vmem:[%s1867_s12 + $0xb0] sm:$0xff] %v1074_v38  ;;  %1170 = vst [vmem:[%s1867_s12 + $0x1b0] sm:$0xff] %v1106_v39  ;;  %v970_v47 = vmul.f32 %v1848_v48, %v871_v41  ;;  %v1434_v49 = vpop.f32.mrf.mxu0  ;;  %v1466_v51 = vpop.f32.mrf.mxu1 }
 0x147   : > { %1136 = vst [vmem:[%s1867_s12 + $0xa0] sm:$0xff] %v1072_v42  ;;  %1168 = vst [vmem:[%s1867_s12 + $0x1a0] sm:$0xff] %v1104_v43  ;;  %v1075_v52 = vmax.f32 %v1011_v44, 0.0  ;;  %v943_v54 = vmul.f32 %v1434_v49, %v1848_v48  ;;  %v975_v55 = vmul.f32 %v1466_v51, %v1848_v48  ;;  %v1009_v56 = vadd.f32 %v1853_v50, %v938_v46 }
 0x148   : > { %v1107_v53 = vmax.f32 %v1043_v45, 0.0  ;;  %v1041_v57 = vadd.f32 %v1853_v50, %v970_v47  ;;  %v756_v58 = vpop.f32.mrf.mxu0  ;;  %v884_v59 = vpop.f32.mrf.mxu1 }
 0x149   : > { %1139 = vst [vmem:[%s1867_s12 + $0xb8] sm:$0xff] %v1075_v52  ;;  %v1014_v60 = vadd.f32 %v1853_v50, %v943_v54  ;;  %v1046_v61 = vadd.f32 %v1853_v50, %v975_v55  ;;  %v941_v62 = vmul.f32 %v1848_v48, %v756_v58  ;;  %v973_v63 = vmul.f32 %v1848_v48, %v884_v59 }
 0x14a   : > { %1171 = vst [vmem:[%s1867_s12 + $0x1b8] sm:$0xff] %v1107_v53  ;;  %v1073_v0 = vmax.f32 %v1009_v56, 0.0  ;;  %v1105_v1 = vmax.f32 %v1041_v57, 0.0  ;;  %v1435_v2 = vpop.f32.mrf.mxu0  ;;  %v1467_v3 = vpop.f32.mrf.mxu1 }
 0x14b   : > { %v1078_v4 = vmax.f32 %v1014_v60, 0.0  ;;  %v1110_v5 = vmax.f32 %v1046_v61, 0.0  ;;  %v1012_v6 = vadd.f32 %v1853_v50, %v941_v62  ;;  %v1044_v7 = vadd.f32 %v1853_v50, %v973_v63 }
 0x14c   : > { %1137 = vst [vmem:[%s1867_s12 + $0xa8] sm:$0xff] %v1073_v0  ;;  %1169 = vst [vmem:[%s1867_s12 + $0x1a8] sm:$0xff] %v1105_v1  ;;  %v944_v8 = vmul.f32 %v1435_v2, %v1848_v48  ;;  %v976_v9 = vmul.f32 %v1467_v3, %v1848_v48  ;;  %v759_v10 = vpop.f32.mrf.mxu0  ;;  %v887_v11 = vpop.f32.mrf.mxu1 }
 0x14d   : > { %1142 = vst [vmem:[%s1867_s12 + $0xd0] sm:$0xff] %v1078_v4  ;;  %1174 = vst [vmem:[%s1867_s12 + $0x1d0] sm:$0xff] %v1110_v5  ;;  %v1076_v12 = vmax.f32 %v1012_v6, 0.0  ;;  %v1108_v13 = vmax.f32 %v1044_v7, 0.0  ;;  %v942_v14 = vmul.f32 %v1848_v48, %v759_v10  ;;  %v974_v15 = vmul.f32 %v1848_v48, %v887_v11 }
 0x14e   : > { %v1015_v16 = vadd.f32 %v1853_v50, %v944_v8  ;;  %v1047_v17 = vadd.f32 %v1853_v50, %v976_v9  ;;  %v1438_v18 = vpop.f32.mrf.mxu0  ;;  %v1470_v19 = vpop.f32.mrf.mxu1 }
 0x14f   : > { %1140 = vst [vmem:[%s1867_s12 + $0xc0] sm:$0xff] %v1076_v12  ;;  %1172 = vst [vmem:[%s1867_s12 + $0x1c0] sm:$0xff] %v1108_v13  ;;  %v1013_v20 = vadd.f32 %v1853_v50, %v942_v14  ;;  %v1045_v21 = vadd.f32 %v1853_v50, %v974_v15  ;;  %v947_v22 = vmul.f32 %v1438_v18, %v1848_v48 }
 0x150   : > { %v979_v23 = vmul.f32 %v1470_v19, %v1848_v48  ;;  %v1079_v24 = vmax.f32 %v1015_v16, 0.0  ;;  %v1111_v25 = vmax.f32 %v1047_v17, 0.0  ;;  %v772_v26 = vpop.f32.mrf.mxu0  ;;  %v900_v27 = vpop.f32.mrf.mxu1 }
 0x151   : > { %v1077_v28 = vmax.f32 %v1013_v20, 0.0  ;;  %v1109_v29 = vmax.f32 %v1045_v21, 0.0  ;;  %v1018_v30 = vadd.f32 %v1853_v50, %v947_v22  ;;  %v945_v32 = vmul.f32 %v1848_v48, %v772_v26 }
 0x152   : > { %v1050_v31 = vadd.f32 %v1853_v50, %v979_v23  ;;  %1143 = vst [vmem:[%s1867_s12 + $0xd8] sm:$0xff] %v1079_v24  ;;  %1175 = vst [vmem:[%s1867_s12 + $0x1d8] sm:$0xff] %v1111_v25  ;;  %v977_v33 = vmul.f32 %v1848_v48, %v900_v27  ;;  %v1439_v34 = vpop.f32.mrf.mxu0  ;;  %v1471_v35 = vpop.f32.mrf.mxu1 }
 0x153   : > { %1141 = vst [vmem:[%s1867_s12 + $0xc8] sm:$0xff] %v1077_v28  ;;  %1173 = vst [vmem:[%s1867_s12 + $0x1c8] sm:$0xff] %v1109_v29  ;;  %v1082_v36 = vmax.f32 %v1018_v30, 0.0  ;;  %v948_v38 = vmul.f32 %v1439_v34, %v1848_v48  ;;  %v980_v39 = vmul.f32 %v1471_v35, %v1848_v48  ;;  %v1016_v40 = vadd.f32 %v1853_v50, %v945_v32 }
 0x154   : > { %v1114_v37 = vmax.f32 %v1050_v31, 0.0  ;;  %v1048_v41 = vadd.f32 %v1853_v50, %v977_v33  ;;  %v775_v42 = vpop.f32.mrf.mxu0  ;;  %v903_v43 = vpop.f32.mrf.mxu1 }
 0x155   : > { %1146 = vst [vmem:[%s1867_s12 + $0xf0] sm:$0xff] %v1082_v36  ;;  %v1019_v44 = vadd.f32 %v1853_v50, %v948_v38  ;;  %v1051_v45 = vadd.f32 %v1853_v50, %v980_v39  ;;  %v946_v46 = vmul.f32 %v1848_v48, %v775_v42  ;;  %v978_v47 = vmul.f32 %v1848_v48, %v903_v43 }
 0x156   : > { %1178 = vst [vmem:[%s1867_s12 + $0x1f0] sm:$0xff] %v1114_v37  ;;  %v1080_v49 = vmax.f32 %v1016_v40, 0.0  ;;  %v1112_v51 = vmax.f32 %v1048_v41, 0.0 }
 0x157   : > { %v1083_v52 = vmax.f32 %v1019_v44, 0.0  ;;  %v1115_v53 = vmax.f32 %v1051_v45, 0.0  ;;  %v1017_v54 = vadd.f32 %v1853_v50, %v946_v46  ;;  %v1049_v55 = vadd.f32 %v1853_v50, %v978_v47  ;;  %1187 = sbr.rel (!%p1715_p5) target bundleno = 375 (0x177), region = 40 }
 0x158   : > { %1144 = vst [vmem:[%s1867_s12 + $0xe0] sm:$0xff] %v1080_v49  ;;  %1176 = vst [vmem:[%s1867_s12 + $0x1e0] sm:$0xff] %v1112_v51 }
 0x159   : > { %1147 = vst [vmem:[%s1867_s12 + $0xf8] sm:$0xff] %v1083_v52  ;;  %1179 = vst [vmem:[%s1867_s12 + $0x1f8] sm:$0xff] %v1115_v53  ;;  %v1081_v56 = vmax.f32 %v1017_v54, 0.0  ;;  %v1113_v57 = vmax.f32 %v1049_v55, 0.0 }
 0x15b   : > { %1145 = vst [vmem:[%s1867_s12 + $0xe8] sm:$0xff] %v1081_v56  ;;  %1177 = vst [vmem:[%s1867_s12 + $0x1e8] sm:$0xff] %v1113_v57 }
 0x15c   : > { %s2125_s14 = smov (!%p1190_p11, %s1189_s14), 64 }
 0x15d   : > { %s2058_s15 = sshll.u32 %s2125_s14, 7 }
 0x15e   : > { %s1194_s16 = ssub.s32 8192, %s2058_s15 }
 0x15f   : > { %1195 = vsyncadd %s2053_s13, %s1194_s16  ;;  %p1345_p12 = scmp.ne.s32.totalorder %s2058_s15, 0  ;;  %s1351_s21 = sshll.u32 %s1698_s0, 13 }
 0x160   : > { %s2067_s24 = scalar_lea.hbm %s2117_s4, %s1351_s21  ;;  %s1200_s6 = sshll.u32 %s1867_s12, 4  ;;  %s2070_s6 = int_to_ptr.vmem [resolvable:$true] %s1200_s6 }
 0x161   : > { %s1584_s28 = scalar_lea.vmem %s2070_s6, %s2058_s15  ;;  %s1646_s29 = smov [#allocation3]  }
 0x162   : > { %p1585_p13 = scmp.ne.s32.totalorder %s2070_s6, %s1584_s28  ;;  %s1588_s30 = sshll.u32 %s1646_s29, 4  ;;  %s1589_s30 = int_to_ptr.vmem [resolvable:$false] %s1588_s30 }
 0x163   : > { %s1590_s0 = scalar_lea.vmem %s1589_s30, 16384  ;;  %p1591_p2 = scmp.lt.s32.totalorder %s2070_s6, %s1589_s30 }
 0x164   : > { %p1586_p0 = pnand %p1585_p13, %p1345_p12  ;;  %p1592_p3 = scmp.lt.s32.totalorder %s1590_s0, %s1584_s28 }
 0x166   : > { %p1587_p1 = pneg %p1586_p0  ;;  %p1593_p4 = por %p1592_p3, %p1591_p2 }
 0x168   : > { %p1594_p5 = pnand %p1593_p4, %p1587_p1 }
 0x16a   : > { %1597 = shalt.err (!%p1594_p5)
}
 0x16b   : > { %s1598_s5 = scalar_lea.hbm %s2067_s24, %s2058_s15  ;;  %s1602_s9 = scalar_lea.hbm %s2117_s4, 16000 }
 0x16c   : > { %p1599_p7 = scmp.ne.s32.totalorder %s2067_s24, %s1598_s5  ;;  %p1603_p10 = scmp.lt.s32.totalorder %s2067_s24, %s2117_s4 }
 0x16d   : > { %p1604_p11 = scmp.lt.s32.totalorder %s1602_s9, %s1598_s5 }
 0x16e   : > { %p1600_p8 = pnand %p1599_p7, %p1345_p12 }
 0x16f   : > { %p1605_p13 = por %p1604_p11, %p1603_p10 }
 0x170   : > { %p1601_p9 = pneg %p1600_p8 }
 0x172   : > { %p1606_p0 = pnand %p1605_p13, %p1601_p9 }
 0x174   : > { %1609 = shalt.err (!%p1606_p0)
}
 0x175   : > { %s1647_s12 = smov 128   ;;  %s1648_s14 = smov 8  }
 0x176   : > { %1206 = dma.vmem_to_hbm [thread:$0]  (%p1345_p12), %s2070_s6, %s2058_s15, %s2067_s24, %s2053_s13, %s1647_s12, %s1647_s12, %s1648_s14  }
 0x177 PF: > { %p1509_p1 = scmp.ge.s32.totalorder %s1644_s20, 2  ;;  %s1215_s16 = sand.u32 1, %s1632_s17  }
 0x178   : > { %s1216_s21 = scalar_lea.sflag [#allocation4], %s1215_s16 }
 0x179   : > { %p1506_p2 = pnand %p1509_p1, %p1719_p6 }
 0x17b   : > { %p1507_p3 = pneg %p1506_p2 }
 0x17d   : > { %1627 = dma.done.wait (%p1507_p3), %s1216_s21, 8192  }
 0x17e   : > { %1629 = vsyncadd (%p1507_p3), %s1216_s21, 4294959104  ;;  %p15_p4 = scmp.ge.s32.totalorder %s1702_s22, 4   ;;  %s2120_s17 = smov %s1636_s18 }
 0x17f   : > { %s2121_s18 = smov %s1640_s19  ;;  %s2122_s19 = smov %s1713_s25 }
 0x180   : > { %s2123_s20 = smov %s1702_s22  ;;  %17 = sbr.rel (!%p15_p4) target bundleno = 5 (0x5), region = 71 }
 0x185   :  { %1221 = vsyncpa [#allocation4], 1 }
 0x186   :  { %1223 = vsyncpa [#allocation4 + $0x1], 1 }

</bundles_post_ra>
